<compile_context>
chip_gen: v5e
topology: v5e:2x2
jax: 0.10.0
libtpu: 0.0.40
codegen_flags: <defaults>
</compile_context>

<pallas_src>
import math
import functools

import jax
import jax.numpy as jnp
from jax import lax
from jax.experimental import pallas as pl
from jax.experimental.pallas import tpu as pltpu

_NEG = -1e30  # finite "minus infinity" (avoids inf-inf NaNs in the online max)


# ----------------------------------------------------------------------------
# Parameter setup (host-side JAX glue): gaussian orthogonal random features
# ----------------------------------------------------------------------------
def gaussian_orthogonal_random_matrix(key, nb_rows, nb_columns, scaling=0):
    nb_full_blocks = nb_rows // nb_columns
    keys = jax.random.split(key, nb_full_blocks + 2)
    blocks = []
    for i in range(nb_full_blocks):
        unstructured = jax.random.normal(keys[i], (nb_columns, nb_columns), jnp.float32)
        qmat, _ = jnp.linalg.qr(unstructured)
        blocks.append(qmat.T)
    remaining = nb_rows - nb_full_blocks * nb_columns
    if remaining > 0:
        unstructured = jax.random.normal(
            keys[nb_full_blocks], (nb_columns, nb_columns), jnp.float32
        )
        qmat, _ = jnp.linalg.qr(unstructured)
        blocks.append(qmat.T[:remaining])
    final_matrix = jnp.concatenate(blocks, axis=0)
    if scaling == 0:
        multiplier = jnp.linalg.norm(
            jax.random.normal(keys[-1], (nb_rows, nb_columns), jnp.float32), axis=1
        )
    elif scaling == 1:
        multiplier = math.sqrt(float(nb_columns)) * jnp.ones((nb_rows,), jnp.float32)
    else:
        raise ValueError(f"Invalid scaling {scaling}")
    return multiplier[:, None] * final_matrix


# ----------------------------------------------------------------------------
# Kernel 1: streamed k-side reduction with online max
#   ctx_aug = [ k'^T @ v | k'^T @ 1 ]   (M_pad, D+1), f32
# ----------------------------------------------------------------------------
def _k_reduce_kernel(k_ref, vaug_ref, proj_ref, ctx_ref, acc_ref, m_ref, vsum_ref, *,
                     m_true, n_true, n_padded, block_k, kernel_eps, diag_scale,
                     log_ratio, ratio, matmul_dtype):
    f32 = jnp.float32
    m_pad = proj_ref.shape[-1]

    def _mm(x):  # skip no-op casts when matmul_dtype already matches
        return x if x.dtype == matmul_dtype else x.astype(matmul_dtype)

    c = pl.program_id(2)
    need_col_mask = (m_true != m_pad)     # static
    need_row_mask = (n_true != n_padded)  # static (only when N was zero-padded)

    @pl.when(c == 0)
    def _():
        m_ref[...] = jnp.full(m_ref.shape, _NEG, f32)
        acc_ref[...] = jnp.zeros(acc_ref.shape, f32)
        vsum_ref[...] = jnp.zeros(vsum_ref.shape, f32)

    k_raw = k_ref[...]        # (bk, D)    input dtype
    v_aug = vaug_ref[...]     # (bk, D+1)  [v | 1]; zero-padded tail rows are all-zero
    proj = proj_ref[...]      # (D, M_pad) pre-scaled by d**-0.25, padded rows zero

    kd = jnp.dot(_mm(k_raw), proj, preferred_element_type=f32)     # (bk, M_pad)

    # Chunk max over the TRUE (rows, features) block; combined with the running
    # max this reproduces torch.amax(data_dash, dim=(-1, -2)) per (b, h).
    kd_m = kd
    if need_col_mask:
        col_ok = lax.broadcasted_iota(jnp.int32, (1, m_pad), 1) < m_true
        kd_m = jnp.where(col_ok, kd_m, _NEG)
    if need_row_mask:
        row_ok = (c * block_k
                  + lax.broadcasted_iota(jnp.int32, (block_k, 1), 0)) < n_true
        kd_m = jnp.where(row_ok, kd_m, _NEG)
    chunk_max = jnp.max(kd_m, axis=(0, 1), keepdims=True)          # (1, 1)

    m_old = m_ref[...]
    m_new = jnp.maximum(m_old, chunk_max)
    alpha = jnp.exp(m_old - m_new)                                 # online rescale
    m_ref[...] = m_new

    k_f32 = k_raw.astype(f32)
    k_diag = jnp.sum(k_f32 * k_f32, axis=-1, keepdims=True) * diag_scale  # (bk, 1)
    # ratio folded into the exponent: exp(kd - kdiag - max + ln ratio)
    kp = jnp.exp(kd - (k_diag + (m_new - log_ratio)))              # (bk, M_pad) f32

    # Fused context / k_cumsum accumulation (MXU): kp^T @ [v | 1].
    # Padded tail rows of v_aug are all-zero -> no per-element row mask needed.
    ctx_chunk = lax.dot_general(_mm(kp), _mm(v_aug), (((0,), (0,)), ((), ())),
                                preferred_element_type=f32)        # (M_pad, D+1)
    acc_ref[...] = alpha * acc_ref[...] + ctx_chunk
    vsum_ref[...] = vsum_ref[...] + jnp.sum(v_aug.astype(f32), axis=0, keepdims=True)

    @pl.when(c == pl.num_programs(2) - 1)
    def _():
        # kernel_eps added analytically (never rescaled, stays f32):
        #   ctx += ratio*eps * colsum(v),   kcum += ratio*eps * N
        ctx = acc_ref[...] + (ratio * kernel_eps) * vsum_ref[...]
        if need_col_mask:
            row_m = lax.broadcasted_iota(jnp.int32, (m_pad, 1), 0) < m_true
            ctx = jnp.where(row_m, ctx, 0.0)                       # zero padded features
        ctx_ref[...] = ctx.astype(ctx_ref.dtype)


# ----------------------------------------------------------------------------
# Kernel 2: q-side feature map + fused (num | den) matmul
# ----------------------------------------------------------------------------
def _q_attend_kernel(q_ref, ctx_ref, proj_ref, o_ref, *,
                     m_true, kernel_eps, attn_eps, diag_scale, log_ratio, ratio,
                     matmul_dtype):
    f32 = jnp.float32
    d = o_ref.shape[-1]
    m_pad = proj_ref.shape[-1]
    d_aug = ctx_ref.shape[-1]

    def _mm(x):
        return x if x.dtype == matmul_dtype else x.astype(matmul_dtype)

    q_raw = q_ref[...]                                             # (bq, D)
    proj = proj_ref[...]                                           # (D, M_pad)
    qd = jnp.dot(_mm(q_raw), proj, preferred_element_type=f32)     # (bq, M_pad)

    if m_true != m_pad:
        col_ok = lax.broadcasted_iota(jnp.int32, (1, m_pad), 1) < m_true
        q_max = jnp.max(jnp.where(col_ok, qd, _NEG), axis=-1, keepdims=True)
    else:
        q_max = jnp.max(qd, axis=-1, keepdims=True)                # (bq, 1)

    q_f32 = q_raw.astype(f32)
    q_diag = jnp.sum(q_f32 * q_f32, axis=-1, keepdims=True) * diag_scale
    q_exp = jnp.exp(qd - (q_diag + (q_max - log_ratio)))           # ratio*exp(...)

    ctx = ctx_ref[...]                                             # (M_pad, D+1) f32
    # q-side +eps applied through the matmul result instead of per element:
    #   sum_m (q_exp[m] + r*eps) * ctx[m] = q_exp @ ctx + r*eps * colsum(ctx)
    eps_row = (ratio * kernel_eps) * jnp.sum(ctx, axis=0, keepdims=True)   # (1, D+1)

    out_aug = jnp.dot(_mm(q_exp), _mm(ctx), preferred_element_type=f32) + eps_row

    lane_ids = lax.broadcasted_iota(jnp.int32, (1, d_aug), 1)
    den = jnp.sum(jnp.where(lane_ids == d, out_aug, 0.0),
                  axis=-1, keepdims=True) + attn_eps               # (bq, 1)
    r = pl.reciprocal(den, approx=True)
    r = r * (2.0 - den * r)                                        # one Newton step
    o_ref[...] = (out_aug[:, :d] * r).astype(o_ref.dtype)


# ----------------------------------------------------------------------------
# Wrapper
# ----------------------------------------------------------------------------
def _round_up(x, m):
    return ((x + m - 1) // m) * m


def _tile_bytes(rows, cols, itemsize):
    """VMEM footprint of a (rows, cols) tile after (8, 128) layout padding."""
    return _round_up(max(int(rows), 1), 8) * _round_up(max(int(cols), 1), 128) * itemsize


def _vmem_capacity_bytes():
    """Physical VMEM per TensorCore; 64 MiB fallback (smallest of v5e/v6e/v7x)."""
    try:
        cap = getattr(pltpu.get_tpu_info(), "vmem_capacity_bytes", None)
        if cap:
            return int(cap)
    except Exception:
        pass
    return 64 << 20


def _pick_block(n, target):
    """Largest multiple-of-8 block <= target; prefers exact divisors (no padding)."""
    t_cap = max(8, (min(target, max(n, 8)) // 8) * 8)
    for t in range(t_cap, 7, -1):
        if t % 8 == 0 and n % t == 0:
            return t
    return t_cap   # no divisor: the wrapper zero-pads N and the kernel masks the tail


def fast_attention(q, k, v, proj, *, kernel_eps=1e-4, attn_eps=1e-6,
                   block_q=1024, block_k=512, matmul_dtype=None):
    """Performer FastAttention forward: softmax-kernel features + linear attention."""
    B, H, N, D = q.shape
    M_true = proj.shape[0]
    assert proj.shape == (M_true, D)

    if matmul_dtype is None:
        # f32 inputs -> f32 matmuls (exact); bf16 inputs already give bf16 MXU
        # operands.  Pass matmul_dtype=jnp.bfloat16 for the v5e/v6e/v7x fast path.
        matmul_dtype = jnp.bfloat16 if q.dtype in (jnp.bfloat16, jnp.float16) else jnp.float32
    matmul_dtype = jnp.dtype(matmul_dtype)

    M_pad = _round_up(M_true, 128)
    D_aug = D + 1
    dn = float(D) ** (-0.25)
    ratio = float(M_true) ** (-0.5)
    log_ratio = math.log(ratio)
    diag_scale = 0.5 * dn * dn

    # Pre-scaled, pre-transposed projection (hoisted out of the kernels); padded
    # feature rows are zero and get masked/zeroed inside the kernels.
    proj_pad = jnp.zeros((M_pad, D), jnp.float32).at[:M_true].set(proj.astype(jnp.float32))
    proj_dm = (dn * proj_pad).T.astype(matmul_dtype)

    in_isz = q.dtype.itemsize
    mm_isz = matmul_dtype.itemsize
    vmem_cap = _vmem_capacity_bytes()
    budget = max(16 << 20, vmem_cap - (8 << 20))

    def _k_vmem(bk):
        return (2 * _tile_bytes(bk, D, in_isz)            # k chunk (double-buffered)
                + 2 * _tile_bytes(bk, D_aug, in_isz)      # [v | 1] chunk
                + 2 * _tile_bytes(D, M_pad, mm_isz)       # proj
                + 2 * _tile_bytes(M_pad, D_aug, 4)        # ctx output block
                + _tile_bytes(M_pad, D_aug, 4)            # accumulator scratch
                + 2 * _tile_bytes(8, 128, 4)              # running max + vsum scratch
                + 6 * _tile_bytes(bk, M_pad, 4)           # kd / kp / mask transients
                + (4 << 20))

    def _q_vmem(bq):
        return (2 * _tile_bytes(bq, D, in_isz)            # q tile
                + 2 * _tile_bytes(bq, D, in_isz)          # out tile
                + 2 * _tile_bytes(M_pad, D_aug, 4)        # ctx block
                + 2 * _tile_bytes(D, M_pad, mm_isz)       # proj
                + 6 * _tile_bytes(bq, M_pad, 4)           # qd / q_exp transients
                + (4 << 20))

    bk_t = block_k
    while True:
        bk = _pick_block(N, bk_t)
        if _k_vmem(bk) <= budget or bk_t <= 8:
            break
        bk_t = max(8, bk_t // 2)
    bq_t = block_q
    while True:
        bq = _pick_block(N, bq_t)
        if _q_vmem(bq) <= budget or bq_t <= 8:
            break
        bq_t = max(8, bq_t // 2)

    nk_chunks = -(-N // bk)
    nq_tiles = -(-N // bq)
    Nk, Nq = nk_chunks * bk, nq_tiles * bq

    # [v | 1] built once here (avoids an in-kernel lane concat).  Zero-padded tail
    # rows (ones column included) contribute nothing to the accumulation.
    v_aug = jnp.concatenate([v, jnp.ones((B, H, N, 1), v.dtype)], axis=-1)
    k_in = k if Nk == N else jnp.pad(k, ((0, 0), (0, 0), (0, Nk - N), (0, 0)))
    v_aug = v_aug if Nk == N else jnp.pad(v_aug, ((0, 0), (0, 0), (0, Nk - N), (0, 0)))
    q_in = q if Nq == N else jnp.pad(q, ((0, 0), (0, 0), (0, Nq - N), (0, 0)))

    common = dict(m_true=M_true, kernel_eps=float(kernel_eps), diag_scale=diag_scale,
                  log_ratio=log_ratio, ratio=ratio, matmul_dtype=matmul_dtype)

    # ---- kernel 1: streamed k-side reduction -> ctx_aug = [k'^T v | k'^T 1] ------
    ctx_aug = pl.pallas_call(
        functools.partial(_k_reduce_kernel, n_true=N, n_padded=Nk, block_k=bk, **common),
        out_shape=jax.ShapeDtypeStruct((B, H, M_pad, D_aug), jnp.float32),
        grid=(B, H, nk_chunks),
        in_specs=[
            pl.BlockSpec((None, None, bk, D), lambda b, h, c: (b, h, c, 0)),
            pl.BlockSpec((None, None, bk, D_aug), lambda b, h, c: (b, h, c, 0)),
            pl.BlockSpec((D, M_pad), lambda b, h, c: (0, 0)),
        ],
        out_specs=pl.BlockSpec((None, None, M_pad, D_aug), lambda b, h, c: (b, h, 0, 0)),
        scratch_shapes=[
            pltpu.VMEM((M_pad, D_aug), jnp.float32),   # online-max rescaled accumulator
            pltpu.VMEM((1, 1), jnp.float32),           # running max
            pltpu.VMEM((1, D_aug), jnp.float32),       # colsum of [v | 1] (eps term)
        ],
        compiler_params=pltpu.CompilerParams(
            dimension_semantics=("parallel", "parallel", "arbitrary"),
            vmem_limit_bytes=int(min(max(32 << 20, _k_vmem(bk)), vmem_cap - (2 << 20)))),
    )(k_in, v_aug, proj_dm)

    # ---- kernel 2: q-side feature map + fused (num | den) matmul -----------------
    out = pl.pallas_call(
        functools.partial(_q_attend_kernel, attn_eps=float(attn_eps), **common),
        out_shape=jax.ShapeDtypeStruct((B, H, Nq, D), q.dtype),
        grid=(B, H, nq_tiles),
        in_specs=[
            pl.BlockSpec((None, None, bq, D), lambda b, h, t: (b, h, t, 0)),
            pl.BlockSpec((None, None, M_pad, D_aug), lambda b, h, t: (b, h, 0, 0)),
            pl.BlockSpec((D, M_pad), lambda b, h, t: (0, 0)),
        ],
        out_specs=pl.BlockSpec((None, None, bq, D), lambda b, h, t: (b, h, t, 0)),
        compiler_params=pltpu.CompilerParams(
            dimension_semantics=("parallel", "parallel", "parallel"),
            vmem_limit_bytes=int(min(max(32 << 20, _q_vmem(bq)), vmem_cap - (2 << 20)))),
    )(q_in, ctx_aug, proj_dm)

    return out if Nq == N else out[:, :, :N, :]


# ----------------------------------------------------------------------------
# Pure-JAX reference (for correctness check)
# ----------------------------------------------------------------------------
def fast_attention_reference(q, k, v, proj, kernel_eps=1e-4, attn_eps=1e-6):
    d = q.shape[-1]
    m = proj.shape[0]
    dn = float(d) ** (-0.25)
    ratio = float(m) ** (-0.5)
    qd = jnp.einsum("bhnd,md->bhnm", q * dn, proj)
    kd = jnp.einsum("bhnd,md->bhnm", k * dn, proj)
    qdiag = jnp.sum(q ** 2, -1, keepdims=True) * 0.5 * dn ** 2
    kdiag = jnp.sum(k ** 2, -1, keepdims=True) * 0.5 * dn ** 2
    qp = ratio * (jnp.exp(qd - qdiag - jnp.max(qd, -1, keepdims=True)) + kernel_eps)
    kp = ratio * (jnp.exp(kd - kdiag - jnp.max(kd, axis=(-1, -2), keepdims=True)) + kernel_eps)
    kc = kp.sum(-2)
    dinv = 1.0 / (jnp.einsum("bhnm,bhm->bhn", qp, kc) + attn_eps)
    ctx = jnp.einsum("bhnm,bhne->bhme", kp, v)
    return jnp.einsum("bhme,bhnm,bhn->bhne", ctx, qp, dinv)


if __name__ == "__main__":
    # Module-consistent small shapes: dim_heads=32 -> nb_features=int(32*ln 32)=110.
    B, H, N, D = 2, 2, 256, 32
    nb_features = int(D * math.log(D))  # 110 (padded to 128 inside the wrapper)

    key = jax.random.PRNGKey(0)
    kq, kk, kv, kp = jax.random.split(key, 4)
    q = jax.random.normal(kq, (B, H, N, D), jnp.float32)
    k = jax.random.normal(kk, (B, H, N, D), jnp.float32)
    v = jax.random.normal(kv, (B, H, N, D), jnp.float32)
    proj = gaussian_orthogonal_random_matrix(kp, nb_features, D, scaling=0)

    ref = jax.block_until_ready(fast_attention_reference(q, k, v, proj))

    # Exact (f32-MXU) path; small blocks so the multi-chunk online-max path runs.
    out = jax.block_until_ready(fast_attention(q, k, v, proj, block_q=64, block_k=64))
    if not jnp.allclose(out, ref, rtol=2e-3, atol=1e-4):
        raise AssertionError("Pallas FastAttention (f32 path) does not match reference")

    # Non-divisible sequence length (exercises padding + tail-chunk masking).
    N2 = 100
    q2, k2, v2 = q[:, :, :N2], k[:, :, :N2], v[:, :, :N2]
    ref2 = jax.block_until_ready(fast_attention_reference(q2, k2, v2, proj))
    out2 = jax.block_until_ready(fast_attention(q2, k2, v2, proj, block_q=64, block_k=64))
    if not jnp.allclose(out2, ref2, rtol=2e-3, atol=1e-4):
        raise AssertionError("Pallas FastAttention (padded-N path) does not match reference")

    # bf16-MXU operand fast path (v5e/v6e/v7x), f32 accumulation + f32 exp math.
    out_bf16 = jax.block_until_ready(
        fast_attention(q, k, v, proj, matmul_dtype=jnp.bfloat16))
    if not jnp.allclose(out_bf16, ref, rtol=1e-1, atol=1e-1):
        raise AssertionError("Pallas FastAttention (bf16 MXU path) diverged from reference")

    print("KERNEL_OK")
</pallas_src>

<mosaic_0001>
module attributes {stable_mosaic.version = 11 : i64} {
  func.func @_k_reduce_kernel(%arg0: i32, %arg1: i32, %arg2: i32, %arg3: memref<1x1x64x32xf32, #tpu.memory_space<vmem>>, %arg4: memref<1x1x64x33xf32, #tpu.memory_space<vmem>>, %arg5: memref<32x128xf32, #tpu.memory_space<vmem>>, %arg6: memref<1x1x128x33xf32, #tpu.memory_space<vmem>>, %arg7: memref<128x33xf32, #tpu.memory_space<vmem>>, %arg8: memref<1x1xf32, #tpu.memory_space<vmem>>, %arg9: memref<1x33xf32, #tpu.memory_space<vmem>>) attributes {dimension_semantics = [#tpu.dimension_semantics<parallel>, #tpu.dimension_semantics<parallel>, #tpu.dimension_semantics<arbitrary>], iteration_bounds = array<i64: 2, 2, 4>, scalar_prefetch = 0 : i64, scratch_operands = 3 : i64, tpu.core_type = #tpu.core_type<tc>, window_params = [{transform_indices = @transform_0, window_bounds = array<i64: 1, 1, 64, 32>}, {transform_indices = @transform_1, window_bounds = array<i64: 1, 1, 64, 33>}, {pipeline_mode = #tpu.pipeline_mode<synchronous>, transform_indices = @transform_2, window_bounds = array<i64: 32, 128>}, {transform_indices = @transform_3, window_bounds = array<i64: 1, 1, 128, 33>}]} {
    %c0_i32 = arith.constant 0 : i32
    %0 = arith.cmpi eq, %arg2, %c0_i32 : i32
    %1 = arith.extui %0 : i1 to i32
    %c0_i32_0 = arith.constant 0 : i32
    %2 = arith.cmpi ne, %1, %c0_i32_0 : i32
    scf.if %2 {
      %cst_30 = arith.constant -1.000000e+30 : f32
      %52 = vector.broadcast %cst_30 : f32 to vector<1x1xf32>
      %c0_31 = arith.constant 0 : index
      %c0_32 = arith.constant 0 : index
      %53 = vector.load %arg8[%c0_31, %c0_32] : memref<1x1xf32, #tpu.memory_space<vmem>>, vector<1x1xf32>
      tpu.vector_store %arg8[%c0_31, %c0_32], %52 {strides = array<i32>} : memref<1x1xf32, #tpu.memory_space<vmem>>, vector<1x1xf32>,
      %cst_33 = arith.constant 0.000000e+00 : f32
      %54 = vector.broadcast %cst_33 : f32 to vector<128x33xf32>
      %c0_34 = arith.constant 0 : index
      %c0_35 = arith.constant 0 : index
      %55 = vector.load %arg7[%c0_34, %c0_35] : memref<128x33xf32, #tpu.memory_space<vmem>>, vector<128x33xf32>
      tpu.vector_store %arg7[%c0_34, %c0_35], %54 {strides = array<i32>} : memref<128x33xf32, #tpu.memory_space<vmem>>, vector<128x33xf32>,
      %cst_36 = arith.constant 0.000000e+00 : f32
      %56 = vector.broadcast %cst_36 : f32 to vector<1x33xf32>
      %c0_37 = arith.constant 0 : index
      %c0_38 = arith.constant 0 : index
      %57 = vector.load %arg9[%c0_37, %c0_38] : memref<1x33xf32, #tpu.memory_space<vmem>>, vector<1x33xf32>
      tpu.vector_store %arg9[%c0_37, %c0_38], %56 {strides = array<i32>} : memref<1x33xf32, #tpu.memory_space<vmem>>, vector<1x33xf32>,
    } else {
    }
    %c0 = arith.constant 0 : index
    %c0_1 = arith.constant 0 : index
    %c0_2 = arith.constant 0 : index
    %c0_3 = arith.constant 0 : index
    %3 = vector.load %arg3[%c0, %c0_1, %c0_2, %c0_3] : memref<1x1x64x32xf32, #tpu.memory_space<vmem>>, vector<1x1x64x32xf32>
    %4 = vector.shape_cast %3 : vector<1x1x64x32xf32> to vector<64x32xf32>
    %c0_4 = arith.constant 0 : index
    %c0_5 = arith.constant 0 : index
    %c0_6 = arith.constant 0 : index
    %c0_7 = arith.constant 0 : index
    %5 = vector.load %arg4[%c0_4, %c0_5, %c0_6, %c0_7] : memref<1x1x64x33xf32, #tpu.memory_space<vmem>>, vector<1x1x64x33xf32>
    %6 = vector.shape_cast %5 : vector<1x1x64x33xf32> to vector<64x33xf32>
    %c0_8 = arith.constant 0 : index
    %c0_9 = arith.constant 0 : index
    %7 = vector.load %arg5[%c0_8, %c0_9] : memref<32x128xf32, #tpu.memory_space<vmem>>, vector<32x128xf32>
    %cst = arith.constant dense<0.000000e+00> : vector<64x128xf32>
    %8 = tpu.matmul %4, %7, %cst {dimension_numbers = #tpu.dot_dimension_numbers<[1], [0], [0], [1], [0, 0, 1, 1], [], []>} : vector<64x32xf32>, vector<32x128xf32>, vector<64x128xf32> -> vector<64x128xf32>
    %9 = tpu.iota {dimensions = array<i32: 1>} : vector<1x128xi32>
    %c110_i32 = arith.constant 110 : i32
    %10 = vector.broadcast %c110_i32 : i32 to vector<1x128xi32>
    %11 = arith.cmpi slt, %9, %10 : vector<1x128xi32>
    %cst_10 = arith.constant -1.000000e+30 : f32
    %12 = vector.shape_cast %11 : vector<1x128xi1> to vector<1x128xi1>
    %13 = vector.broadcast %12 : vector<1x128xi1> to vector<64x128xi1>
    %14 = vector.broadcast %cst_10 : f32 to vector<64x128xf32>
    %15 = arith.select %13, %8, %14 : vector<64x128xi1>, vector<64x128xf32>
    %16 = vector.shape_cast %15 : vector<64x128xf32> to vector<1x64x128xf32>
    %cst_11 = arith.constant dense<0xFF800000> : vector<1xf32>
    %17 = vector.multi_reduction <maximumf>, %16, %cst_11 [1, 2] : vector<1x64x128xf32> to vector<1xf32>
    %18 = vector.shape_cast %17 : vector<1xf32> to vector<1x1x1xf32>
    %19 = vector.extract %18[0, 0, 0] : f32 from vector<1x1x1xf32>
    %20 = vector.broadcast %19 : f32 to vector<1x1xf32>
    %c0_12 = arith.constant 0 : index
    %c0_13 = arith.constant 0 : index
    %21 = vector.load %arg8[%c0_12, %c0_13] : memref<1x1xf32, #tpu.memory_space<vmem>>, vector<1x1xf32>
    %22 = arith.maximumf %21, %20 : vector<1x1xf32>
    %23 = arith.subf %21, %22 : vector<1x1xf32>
    %24 = math.exp %23 : vector<1x1xf32>
    %c0_14 = arith.constant 0 : index
    %c0_15 = arith.constant 0 : index
    %25 = vector.load %arg8[%c0_14, %c0_15] : memref<1x1xf32, #tpu.memory_space<vmem>>, vector<1x1xf32>
    tpu.vector_store %arg8[%c0_14, %c0_15], %22 {strides = array<i32>} : memref<1x1xf32, #tpu.memory_space<vmem>>, vector<1x1xf32>,
    %26 = arith.mulf %4, %4 : vector<64x32xf32>
    %cst_16 = arith.constant dense<0.000000e+00> : vector<64xf32>
    %27 = vector.multi_reduction <add>, %26, %cst_16 [1] : vector<64x32xf32> to vector<64xf32>
    %28 = vector.shape_cast %27 : vector<64xf32> to vector<64x1xf32>
    %cst_17 = arith.constant 0.0883883461 : f32
    %29 = vector.broadcast %cst_17 : f32 to vector<64x1xf32>
    %30 = arith.mulf %28, %29 : vector<64x1xf32>
    %cst_18 = arith.constant -2.35024023 : f32
    %31 = vector.broadcast %cst_18 : f32 to vector<1x1xf32>
    %32 = arith.subf %22, %31 : vector<1x1xf32>
    %33 = vector.broadcast %32 : vector<1x1xf32> to vector<64x1xf32>
    %34 = arith.addf %30, %33 : vector<64x1xf32>
    %35 = vector.broadcast %34 : vector<64x1xf32> to vector<64x128xf32>
    %36 = arith.subf %8, %35 : vector<64x128xf32>
    %37 = math.exp %36 : vector<64x128xf32>
    %cst_19 = arith.constant dense<0.000000e+00> : vector<128x33xf32>
    %38 = tpu.matmul %37, %6, %cst_19 {dimension_numbers = #tpu.dot_dimension_numbers<[0], [0], [1], [1], [0, 1, 1, 1], [], []>} : vector<64x128xf32>, vector<64x33xf32>, vector<128x33xf32> -> vector<128x33xf32>
    %c0_20 = arith.constant 0 : index
    %c0_21 = arith.constant 0 : index
    %39 = vector.load %arg7[%c0_20, %c0_21] : memref<128x33xf32, #tpu.memory_space<vmem>>, vector<128x33xf32>
    %40 = vector.broadcast %24 : vector<1x1xf32> to vector<128x33xf32>
    %41 = arith.mulf %40, %39 : vector<128x33xf32>
    %42 = arith.addf %41, %38 : vector<128x33xf32>
    %c0_22 = arith.constant 0 : index
    %c0_23 = arith.constant 0 : index
    %43 = vector.load %arg7[%c0_22, %c0_23] : memref<128x33xf32, #tpu.memory_space<vmem>>, vector<128x33xf32>
    tpu.vector_store %arg7[%c0_22, %c0_23], %42 {strides = array<i32>} : memref<128x33xf32, #tpu.memory_space<vmem>>, vector<128x33xf32>,
    %c0_24 = arith.constant 0 : index
    %c0_25 = arith.constant 0 : index
    %44 = vector.load %arg9[%c0_24, %c0_25] : memref<1x33xf32, #tpu.memory_space<vmem>>, vector<1x33xf32>
    %cst_26 = arith.constant dense<0.000000e+00> : vector<33xf32>
    %45 = vector.multi_reduction <add>, %6, %cst_26 [0] : vector<64x33xf32> to vector<33xf32>
    %46 = vector.shape_cast %45 : vector<33xf32> to vector<1x33xf32>
    %47 = arith.addf %44, %46 : vector<1x33xf32>
    %c0_27 = arith.constant 0 : index
    %c0_28 = arith.constant 0 : index
    %48 = vector.load %arg9[%c0_27, %c0_28] : memref<1x33xf32, #tpu.memory_space<vmem>>, vector<1x33xf32>
    tpu.vector_store %arg9[%c0_27, %c0_28], %47 {strides = array<i32>} : memref<1x33xf32, #tpu.memory_space<vmem>>, vector<1x33xf32>,
    %c3_i32 = arith.constant 3 : i32
    %49 = arith.cmpi eq, %arg2, %c3_i32 : i32
    %50 = arith.extui %49 : i1 to i32
    %c0_i32_29 = arith.constant 0 : i32
    %51 = arith.cmpi ne, %50, %c0_i32_29 : i32
    scf.if %51 {
      %c0_30 = arith.constant 0 : index
      %c0_31 = arith.constant 0 : index
      %52 = vector.load %arg7[%c0_30, %c0_31] : memref<128x33xf32, #tpu.memory_space<vmem>>, vector<128x33xf32>
      %c0_32 = arith.constant 0 : index
      %c0_33 = arith.constant 0 : index
      %53 = vector.load %arg9[%c0_32, %c0_33] : memref<1x33xf32, #tpu.memory_space<vmem>>, vector<1x33xf32>
      %cst_34 = arith.constant 9.53462586E-6 : f32
      %54 = vector.broadcast %cst_34 : f32 to vector<1x33xf32>
      %55 = arith.mulf %54, %53 : vector<1x33xf32>
      %56 = vector.broadcast %55 : vector<1x33xf32> to vector<128x33xf32>
      %57 = arith.addf %52, %56 : vector<128x33xf32>
      %58 = tpu.iota {dimensions = array<i32: 0>} : vector<128x1xi32>
      %c110_i32_35 = arith.constant 110 : i32
      %59 = vector.broadcast %c110_i32_35 : i32 to vector<128x1xi32>
      %60 = arith.cmpi slt, %58, %59 : vector<128x1xi32>
      %cst_36 = arith.constant 0.000000e+00 : f32
      %61 = vector.shape_cast %60 : vector<128x1xi1> to vector<128x1xi1>
      %62 = vector.broadcast %61 : vector<128x1xi1> to vector<128x33xi1>
      %63 = vector.broadcast %cst_36 : f32 to vector<128x33xf32>
      %64 = arith.select %62, %57, %63 : vector<128x33xi1>, vector<128x33xf32>
      %c0_37 = arith.constant 0 : index
      %c0_38 = arith.constant 0 : index
      %c0_39 = arith.constant 0 : index
      %c0_40 = arith.constant 0 : index
      %65 = vector.load %arg6[%c0_37, %c0_38, %c0_39, %c0_40] : memref<1x1x128x33xf32, #tpu.memory_space<vmem>>, vector<1x1x128x33xf32>
      %66 = vector.shape_cast %65 : vector<1x1x128x33xf32> to vector<128x33xf32>
      %67 = vector.shape_cast %64 : vector<128x33xf32> to vector<1x1x128x33xf32>
      tpu.vector_store %arg6[%c0_37, %c0_38, %c0_39, %c0_40], %67 {strides = array<i32>} : memref<1x1x128x33xf32, #tpu.memory_space<vmem>>, vector<1x1x128x33xf32>,
    } else {
    }
    return
  }
  func.func @transform_0(%arg0: i32, %arg1: i32, %arg2: i32) -> (i32, i32, i32, i32) {
    %c0_i32 = arith.constant 0 : i32
    %c0_i32_0 = arith.constant 0 : i32
    return %arg0, %arg1, %arg2, %c0_i32 : i32, i32, i32, i32
  }
  func.func @transform_1(%arg0: i32, %arg1: i32, %arg2: i32) -> (i32, i32, i32, i32) {
    %c0_i32 = arith.constant 0 : i32
    %c0_i32_0 = arith.constant 0 : i32
    return %arg0, %arg1, %arg2, %c0_i32 : i32, i32, i32, i32
  }
  func.func @transform_2(%arg0: i32, %arg1: i32, %arg2: i32) -> (i32, i32) {
    %c0_i32 = arith.constant 0 : i32
    %c0_i32_0 = arith.constant 0 : i32
    %c0_i32_1 = arith.constant 0 : i32
    return %c0_i32, %c0_i32_0 : i32, i32
  }
  func.func @transform_3(%arg0: i32, %arg1: i32, %arg2: i32) -> (i32, i32, i32, i32) {
    %c0_i32 = arith.constant 0 : i32
    %c0_i32_0 = arith.constant 0 : i32
    %c0_i32_1 = arith.constant 0 : i32
    return %arg0, %arg1, %c0_i32, %c0_i32_0 : i32, i32, i32, i32
  }
}

</mosaic_0001>

<bundles_post_ra>
// kernel: tpu_custom_call.1
= control target key start
LH: loop header
LB: loop body
LE: loop exit
PB: predicated region body
PF: predicated region fallthrough
CT: control target
= control target key end

     0   :  { %s1277_s12 = smov 0   ;;  %s1279_s13 = smov 0   ;;  %s1544_s0 = inlined_call_operand.vmem [shape: f32[2,2,256,32], index: 0, kind: input, shape index: {}]   ;;  %s1545_s1 = inlined_call_operand.vmem [shape: f32[2,2,256,33], index: 1, kind: input, shape index: {}]   ;;  %s1546_s2 = inlined_call_operand.vmem [shape: f32[32,128], index: 2, kind: input, shape index: {}]   ;;  %s1547_s3 = inlined_call_operand.vmem [shape: f32[2,2,128,33], index: 3, kind: output, shape index: {}]  }
   0x1   :  { %s1281_s14 = smov 0   ;;  %s1283_s15 = smov 0  }
   0x2   :  { %s1285_s16 = smov 0   ;;  %s1287_s17 = smov 0  }
   0x3   :  { %s1289_s18 = smov 0  }
   0x4 LB: > { %s25_s19 = sadd.s32 1, %s1239_s15  ;;  %s28_s20 = sadd.s32 1, %s1243_s16  ;;  %s1251_s18 = sphi %s1289_s18, %s13_s18   ;;  %s1247_s17 = sphi %s1287_s17, %s1555_s17   ;;  %s1243_s16 = sphi %s1285_s16, %s1554_s16   ;;  %s1239_s15 = sphi %s1283_s15, %s1553_s15   ;;  %s1235_s14 = sphi %s1281_s14, %s1552_s14   ;;  %s1231_s13 = sphi %s1279_s13, %s1551_s13   ;;  %s1227_s12 = sphi %s1277_s12, %s1550_s12  }
   0x5   : > { %p26_p0 = scmp.ge.s32.totalorder %s25_s19, 4  ;;  %p1056_p1 = scmp.ge.s32.totalorder %s1251_s18, 1 }
   0x6   : > { %p194_p2 = scmp.lt.s32.totalorder %s1251_s18, 17  ;;  %s32_s21 = sadd.s32 1, %s1247_s17 }
   0x7   : > { %s1557_s19 = smov (%p26_p0, %s25_s19), 0  ;;  %s1559_s20 = smov (!%p26_p0, %s28_s20), %s1243_s16 }
   0x8   : > { %p195_p3 = pnand %p1056_p1, %p194_p2  ;;  %p30_p4 = scmp.ge.s32.totalorder %s1559_s20, 2 }
   0x9   : > { %s1057_s22 = sshll.u32 (!%p195_p3), %s1227_s12, 3  ;;  %p244_p6 = scmp.lt.s32.totalorder (!%p195_p3), %s1235_s14, 1 }
   0xa   : > { %s1561_s20 = smov (%p30_p4, %s1559_s20), 0  ;;  %s1563_s21 = smov (!%p30_p4, %s32_s21), %s1247_s17 }
   0xb   : > { %p34_p5 = scmp.ge.s32.totalorder %s1563_s21, 2  ;;  %198 = sbr.rel (%p195_p3) target bundleno = 988 (0x3dc), region = 32 }
   0xc   : > { %p246_p7 = scmp.lt.s32.totalorder (!%p195_p3), %s1231_s13, 1  ;;  %p248_p8 = scmp.lt.s32.totalorder (!%p195_p3), %s1057_s22, 31 }
   0xd   : > { %s1565_s21 = smov (%p34_p5, %s1563_s21), 0  ;;  %p1068_p9 = scmp.ne.s32.totalorder (!%p195_p3), %s1227_s12, 0 }
   0xe   : > { %1548 = sst [smem:[#allocation5_spill]] %s1565_s21 }
  0x10   : > { %s1567_s14 = smov (!%p244_p6, %s1235_s14), 1  ;;  %s1569_s13 = smov (!%p246_p7, %s1231_s13), 1 }
  0x11   : > { %s1571_s22 = smov (!%p248_p8, %s1057_s22), 31  ;;  %s1058_s23 = sshll.u32 %s1569_s13, 5 }
  0x12   : > { %s1059_s24 = sshll.u32 %s1567_s14, 6  ;;  %s251_s25 = sadd.s32 %s1058_s23, %s1571_s22 }
  0x13   : > { %s1065_s26 = sshll.u32 %s1569_s13, 4  ;;  %s253_s27 = sadd.s32 %s1059_s24, %s251_s25 }
  0x14   : > { %s1066_s28 = sshll.u32 %s1567_s14, 5  ;;  %s1060_s29 = sshll.u32 %s253_s27, 3 }
  0x15   : > { %s277_s30 = sadd.s32 %s1066_s28, %s1065_s26  ;;  %s1325_s6 = scalar_lea.vmem %s1544_s0, %s1060_s29 }
  0x16   : > { %s1330_s9 = scalar_lea.vmem %s1545_s1, %s1060_s29  ;;  %s1067_s10 = sshll.u32 %s277_s30, 3 }
  0x17   : > { %s1335_s22 = scalar_lea.vmem %s1547_s3, %s1067_s10  ;;  %283 = sbr.rel (%p1068_p9) target bundleno = 47 (0x2f), region = 36 }
  0x1c   : > { %vm284_vm0 = vcmask 0   ;;  %vm286_vm1 = vcmask 269312   ;;  %v1253_v0 = vmov -1e+30   ;;  %v1254_v1 = vmov 0.0  }
  0x1d   : > { %285 = vst.msk [vmem:[#allocation3] sm:$0x1] %vm284_vm0, %v1253_v0  ;;  %vm303_vm2 = vcmask 262144  }
  0x1e   : > { %287 = vst.msk [vmem:[#allocation2] sm:$0xff] %vm286_vm1, %v1254_v1 }
  0x1f   : > { %288 = vst.msk [vmem:[#allocation2 + $0x8] sm:$0xff] %vm286_vm1, %v1254_v1 }
  0x20   : > { %289 = vst.msk [vmem:[#allocation2 + $0x10] sm:$0xff] %vm286_vm1, %v1254_v1 }
  0x21   : > { %290 = vst.msk [vmem:[#allocation2 + $0x18] sm:$0xff] %vm286_vm1, %v1254_v1 }
  0x22   : > { %291 = vst.msk [vmem:[#allocation2 + $0x20] sm:$0xff] %vm286_vm1, %v1254_v1 }
  0x23   : > { %292 = vst.msk [vmem:[#allocation2 + $0x28] sm:$0xff] %vm286_vm1, %v1254_v1 }
  0x24   : > { %293 = vst.msk [vmem:[#allocation2 + $0x30] sm:$0xff] %vm286_vm1, %v1254_v1 }
  0x25   : > { %294 = vst.msk [vmem:[#allocation2 + $0x38] sm:$0xff] %vm286_vm1, %v1254_v1 }
  0x26   : > { %295 = vst.msk [vmem:[#allocation2 + $0x40] sm:$0xff] %vm286_vm1, %v1254_v1 }
  0x27   : > { %296 = vst.msk [vmem:[#allocation2 + $0x48] sm:$0xff] %vm286_vm1, %v1254_v1 }
  0x28   : > { %297 = vst.msk [vmem:[#allocation2 + $0x50] sm:$0xff] %vm286_vm1, %v1254_v1 }
  0x29   : > { %298 = vst.msk [vmem:[#allocation2 + $0x58] sm:$0xff] %vm286_vm1, %v1254_v1 }
  0x2a   : > { %299 = vst.msk [vmem:[#allocation2 + $0x60] sm:$0xff] %vm286_vm1, %v1254_v1 }
  0x2b   : > { %300 = vst.msk [vmem:[#allocation2 + $0x68] sm:$0xff] %vm286_vm1, %v1254_v1 }
  0x2c   : > { %301 = vst.msk [vmem:[#allocation2 + $0x70] sm:$0xff] %vm286_vm1, %v1254_v1 }
  0x2d   : > { %302 = vst.msk [vmem:[#allocation2 + $0x78] sm:$0xff] %vm286_vm1, %v1254_v1 }
  0x2e   : > { %304 = vst.msk [vmem:[#allocation4] sm:$0x1] %vm303_vm2, %v1254_v1 }
  0x2f PF: > { %v324_v2 = vld [vmem:[%s1546_s2 + $0x18] sm:$0xff]  ;;  %v323_v3 = vld [vmem:[%s1546_s2 + $0x10] sm:$0xff]  ;;  %v322_v4 = vld [vmem:[%s1546_s2 + $0x8] sm:$0xff]  ;;  %vm325_vm3 = vcmask 261120   ;;  %v391_v28 = vlaneseq  ;;  %v1255_v62 = vmov 0   ;;  %vm426_vm5 = vcmask 0  }
  0x30   : > { %362 = vmatpush.msra.mxu0 %v324_v2  ;;  %v321_v5 = vld [vmem:[%s1546_s2] sm:$0xff]  ;;  %v306_v7 = vld [vmem:[%s1325_s6 + $0x8] sm:$0xff]  ;;  %v307_v8 = vld [vmem:[%s1325_s6 + $0x10] sm:$0xff]  ;;  %1178 = vset.pattern.permute.xlu2 %v1255_v62  ;;  %vm744_vm6 = vcmask 269312   ;;  %vm784_vm7 = vcmask 262144   ;;  %vm576_vm8 = vcmask 523264  }
  0x31   : > { %v305_v6 = vld [vmem:[%s1325_s6] sm:$0xff]  ;;  %v308_v9 = vld [vmem:[%s1325_s6 + $0x18] sm:$0xff]  ;;  %v310_v11 = vld [vmem:[%s1325_s6 + $0x28] sm:$0xff]  ;;  %v429_v20 = vmul.f32 %v306_v7, %v306_v7  ;;  %v430_v24 = vmul.f32 %v307_v8, %v307_v8  ;;  %v392_v31 = vand.u32 127, %v391_v28  ;;  %1177 = vset.pattern.permute.xlu1 %v1255_v62  ;;  %1176 = vset.pattern.permute.xlu0 %v1255_v62  ;;  %p1094_p10 = scmp.ne.s32.totalorder %s1227_s12, 3 }
  0x32   : > { %363 = vmatpush.msra.mxu0 %v323_v3  ;;  %v309_v10 = vld [vmem:[%s1325_s6 + $0x20] sm:$0xff]  ;;  %v311_v12 = vld [vmem:[%s1325_s6 + $0x30] sm:$0xff]  ;;  %v312_v13 = vld [vmem:[%s1325_s6 + $0x38] sm:$0xff]  ;;  %v431_v19 = vmul.f32 %v308_v9, %v308_v9  ;;  %v428_v51 = vmul.f32 %v305_v6, %v305_v6  ;;  %v433_v53 = vmul.f32 %v310_v11, %v310_v11 }
  0x33   : > { %v439_v22 = vsel %vm325_vm3, %v429_v20, 0.0  ;;  %v432_v23 = vmul.f32 %v309_v10, %v309_v10  ;;  %v442_v27 = vsel %vm325_vm3, %v430_v24, 0.0  ;;  %v435_v29 = vmul.f32 %v312_v13, %v312_v13  ;;  %v421_v1 = vld [vmem:[#allocation3] sm:$0x1]  ;;  %v314_v62 = vld [vmem:[%s1330_s9 + $0x8] sm:$0xff] }
  0x34   : > { %364 = vmatpush.msra.mxu0 %v322_v4  ;;  %v445_v21 = vsel %vm325_vm3, %v431_v19, 0.0  ;;  %440 = vadd.xlane.f32.xlu1 %v439_v22  ;;  %v434_v30 = vmul.f32 %v311_v12, %v311_v12  ;;  %vm393_vm4 = vcmp.lt.s32.totalorder %v392_v31, 110  ;;  %v436_v52 = vsel %vm325_vm3, %v428_v51, 0.0 }
  0x35   : > { %446 = vadd.xlane.f32.xlu2 %v445_v21  ;;  %v448_v26 = vsel %vm325_vm3, %v432_v23, 0.0  ;;  %v457_v33 = vsel %vm325_vm3, %v435_v29, 0.0  ;;  %v451_v54 = vsel %vm325_vm3, %v433_v53, 0.0 }
  0x36   : > { %365 = vmatpush.msra.mxu0 %v321_v5  ;;  %v454_v34 = vsel %vm325_vm3, %v434_v30, 0.0 }
  0x37   : > { %1069 = vmatmul.msk.f32.vlgmr.msra.gmra.mxu0 %vm325_vm3, %v305_v6 }
  0x3c   : > { %443 = vadd.xlane.f32.xlu1 %v442_v27 }
  0x3d   : > { %449 = vadd.xlane.f32.xlu2 %v448_v26 }
  0x3f   : > { %1070 = vmatmul.msk.f32.gmra.mxu0 %vm325_vm3, %v306_v7 }
  0x44   : > { %455 = vadd.xlane.f32.xlu1 %v454_v34 }
  0x45   : > { %458 = vadd.xlane.f32.xlu2 %v457_v33 }
  0x47   : > { %1071 = vmatmul.msk.f32.gmra.mxu0 %vm325_vm3, %v307_v8 }
  0x4f   : > { %1072 = vmatmul.msk.f32.gmra.mxu0 %vm325_vm3, %v308_v9 }
  0x57   : > { %1073 = vmatmul.msk.f32.gmra.mxu0 %vm325_vm3, %v309_v10 }
  0x5f   : > { %1074 = vmatmul.msk.f32.gmra.mxu0 %vm325_vm3, %v310_v11 }
  0x67   : > { %1075 = vmatmul.msk.f32.gmra.mxu0 %vm325_vm3, %v311_v12 }
  0x6f   : > { %1076 = vmatmul.msk.f32.gmra.mxu0 %vm325_vm3, %v312_v13 }
  0xa7   : > { %v441_v0 = vpop.xlane.xlu1 %440 }
  0xa8   : > { %v447_v63 = vpop.xlane.xlu2 %446  ;;  %v461_v9 = vmul.f32 0.088388346, %v441_v0  ;;  %v763_v0 = vsel %vm744_vm6, %v314_v62, 0.0 }
  0xa9   : > { %v463_v21 = vmul.f32 0.088388346, %v447_v63  ;;  %v313_v63 = vld [vmem:[%s1330_s9] sm:$0xff] }
  0xaf   : > { %v444_v5 = vpop.xlane.xlu1 %443 }
  0xb0   : > { %v450_v2 = vpop.xlane.xlu2 %449  ;;  %v462_v6 = vmul.f32 0.088388346, %v444_v5 }
  0xb1   : > { %v464_v22 = vmul.f32 0.088388346, %v450_v2  ;;  %v317_v2 = vld [vmem:[%s1330_s9 + $0x20] sm:$0xff] }
  0xb4   : > { %v1382_v14 = vpop.f32.mrf.mxu0 }
  0xb5   : > { %v396_v39 = vsel %vm393_vm4, %v1382_v14, -1e+30 }
  0xb7   : > { %v456_v31 = vpop.xlane.xlu1 %455 }
  0xb8   : > { %v459_v20 = vpop.xlane.xlu2 %458 }
  0xb9   : > { %v467_v23 = vmul.f32 0.088388346, %v459_v20 }
  0xbc   : > { %v1384_v15 = vpop.f32.mrf.mxu0 }
  0xbd   : > { %v397_v36 = vsel %vm393_vm4, %v1384_v15, -1e+30 }
  0xc4   : > { %v1386_v16 = vpop.f32.mrf.mxu0 }
  0xc5   : > { %v398_v42 = vsel %vm393_vm4, %v1386_v16, -1e+30 }
  0xcc   : > { %v1388_v17 = vpop.f32.mrf.mxu0 }
  0xcd   : > { %v399_v43 = vsel %vm393_vm4, %v1388_v17, -1e+30 }
  0xd4   : > { %v1390_v18 = vpop.f32.mrf.mxu0 }
  0xd5   : > { %v400_v37 = vsel %vm393_vm4, %v1390_v18, -1e+30 }
  0xd6   : > { %v404_v45 = vmax.f32 %v396_v39, %v400_v37 }
  0xdc   : > { %v1394_v25 = vpop.f32.mrf.mxu0 }
  0xdd   : > { %v401_v35 = vsel %vm393_vm4, %v1394_v25, -1e+30 }
  0xde   : > { %v405_v40 = vmax.f32 %v397_v36, %v401_v35  ;;  %v466_v35 = vmul.f32 0.088388346, %v456_v31 }
  0xe0   : > { %v408_v48 = vmax.f32 %v404_v45, %v405_v40 }
  0xe4   : > { %v1399_v32 = vpop.f32.mrf.mxu0 }
  0xe5   : > { %v402_v38 = vsel %vm393_vm4, %v1399_v32, -1e+30 }
  0xe6   : > { %v406_v46 = vmax.f32 %v398_v42, %v402_v38 }
  0xec   : > { %v1408_v41 = vpop.f32.mrf.mxu0 }
  0xed   : > { %v403_v44 = vsel %vm393_vm4, %v1408_v41, -1e+30 }
  0xee   : > { %v407_v47 = vmax.f32 %v399_v43, %v403_v44 }
  0xf0   : > { %v409_v49 = vmax.f32 %v406_v46, %v407_v47 }
  0xf2   : > { %v410_v50 = vmax.f32 %v408_v48, %v409_v49 }
  0xf4   : > { %411 = vmax.xlane.f32.xlu0 %v410_v50 }
  0xfc   : > { %437 = vadd.xlane.f32.xlu0 %v436_v52 }
 0x104   : > { %452 = vadd.xlane.f32.xlu0 %v451_v54 }
 0x167   : > { %v412_v55 = vpop.xlane.xlu0 %411 }
 0x168   : > { %v413_v56 = vrot.slane %v412_v55, 4 }
 0x16a   : > { %v414_v57 = vmax.f32 %v412_v55, %v413_v56 }
 0x16c   : > { %v415_v58 = vrot.slane %v414_v57, 2 }
 0x16e   : > { %v416_v59 = vmax.f32 %v414_v57, %v415_v58  ;;  %v320_v58 = vld [vmem:[%s1330_s9 + $0x38] sm:$0xff] }
 0x16f   : > { %v438_v7 = vpop.xlane.xlu0 %437  ;;  %633 = vmatpush.msra.mxu1 %v320_v58  ;;  %1097 = vmatpush.msra.mxu2 %v320_v58 }
 0x170   : > { %v417_v60 = vrot.slane %v416_v59, 1  ;;  %v460_v10 = vmul.f32 0.088388346, %v438_v7  ;;  %1098 = vmatpush.msra.mxu3 %v320_v58 }
 0x172   : > { %v418_v61 = vmax.f32 %v416_v59, %v417_v60  ;;  %v319_v59 = vld [vmem:[%s1330_s9 + $0x30] sm:$0xff]  ;;  %v318_v60 = vld [vmem:[%s1330_s9 + $0x28] sm:$0xff] }
 0x173   : > { %634 = vmatpush.msra.mxu1 %v319_v59  ;;  %1099 = vmatpush.msra.mxu2 %v319_v59 }
 0x174   : > { %1113 = vpush %v418_v61  ;;  %v315_v61 = vld [vmem:[%s1330_s9 + $0x10] sm:$0xff]  ;;  %1100 = vmatpush.msra.mxu3 %v319_v59 }
 0x175   : > { %635 = vmatpush.msra.mxu1 %v318_v60  ;;  %1101 = vmatpush.msra.mxu2 %v318_v60 }
 0x176   : > { %1102 = vmatpush.msra.mxu3 %v318_v60 }
 0x177   : > { %v453_v29 = vpop.xlane.xlu0 %452  ;;  %636 = vmatpush.msra.mxu1 %v317_v2  ;;  %1103 = vmatpush.msra.mxu2 %v317_v2 }
 0x178   : > { %v465_v34 = vmul.f32 0.088388346, %v453_v29  ;;  %1104 = vmatpush.msra.mxu3 %v317_v2 }
 0x1a5   : > { %s1114_s28 = spop %1113 }
 0x1a6   : > { %v420_v3 = vstv %s1114_s28 }
 0x1a7   : > { %v422_v4 = vmax.f32 %v421_v1, %v420_v3 }
 0x1a9   : > { %427 = vst.msk [vmem:[#allocation3] sm:$0x1] %vm426_vm5, %v422_v4  ;;  %v1077_v8 = vadd.f32 2.3502402, %v422_v4  ;;  %v423_v24 = vsub.f32 %v421_v1, %v422_v4  ;;  %v762_v1 = vsel %vm744_vm6, %v313_v63, 0.0 }
 0x1aa   : > { %v764_v3 = vadd.f32 %v763_v0, %v762_v1  ;;  %v693_v1 = vld [vmem:[#allocation2 + $0x18] sm:$0xff] }
 0x1ab   : > { %v470_v11 = vperm.slane %v1077_v8, 0  ;;  %v424_v33 = vmul.f32 1.442695, %v423_v24 }
 0x1ad   : > { %v474_v12 = vadd.f32 %v470_v11, %v462_v6  ;;  %v473_v13 = vadd.f32 %v470_v11, %v461_v9  ;;  %v472_v19 = vadd.f32 %v470_v11, %v460_v10  ;;  %v475_v26 = vadd.f32 %v470_v11, %v463_v21 }
 0x1ae   : > { %v479_v27 = vadd.f32 %v470_v11, %v467_v23  ;;  %v476_v30 = vadd.f32 %v470_v11, %v464_v22  ;;  %v477_v36 = vadd.f32 %v470_v11, %v465_v34  ;;  %1179 = vpow2.f32 %v424_v33 }
 0x1af   : > { %492 = vperm.xlu2 %1178, %v474_v12   ;;  %487 = vperm.xlu1 %1177, %v473_v13   ;;  %v478_v37 = vadd.f32 %v470_v11, %v466_v35  ;;  %v769_v9 = vsel %vm744_vm6, %v317_v2, 0.0  ;;  %v771_v12 = vsel %vm744_vm6, %v318_v60, 0.0  ;;  %v775_v22 = vsel %vm744_vm6, %v320_v58, 0.0 }
 0x1b0   : > { %482 = vperm.xlu0 %1176, %v472_v19   ;;  %v773_v19 = vsel %vm744_vm6, %v319_v59, 0.0  ;;  %v691_v59 = vld [vmem:[#allocation2 + $0x8] sm:$0xff] }
 0x1b4   : > { %v1180_v38 = vpop.eup %1179 }
 0x1b5   : > { %v707_v39 = vperm.slane %v1180_v38, 0 }
 0x1b7   : > { %497 = vperm.xlu2 %1178, %v475_v26   ;;  %502 = vperm.xlu1 %1177, %v476_v30  }
 0x1b8   : > { %517 = vperm.xlu0 %1176, %v479_v27  }
 0x1bf   : > { %507 = vperm.xlu2 %1178, %v477_v36   ;;  %512 = vperm.xlu1 %1177, %v478_v37   ;;  %v761_v37 = vld [vmem:[#allocation4] sm:$0x1] }
 0x1c7   : > { %709 = vperm.xlu1 %1177, %v707_v39  }
 0x209   : > { %v493_v46 = vpop.permute.xlu2 %492 }
 0x20a   : > { %v522_v49 = vsub.f32 %v1386_v16, %v493_v46 }
 0x20c   : > { %v532_v50 = vmul.f32 1.442695, %v522_v49 }
 0x211   : > { %v498_v51 = vpop.permute.xlu2 %497 }
 0x219   : > { %v508_v56 = vpop.permute.xlu2 %507 }
 0x221   : > { %v488_v43 = vpop.permute.xlu1 %487 }
 0x222   : > { %v483_v40 = vpop.permute.xlu0 %482  ;;  %v521_v45 = vsub.f32 %v1384_v15, %v488_v43 }
 0x223   : > { %v520_v42 = vsub.f32 %v1382_v14, %v483_v40  ;;  %v523_v14 = vsub.f32 %v1388_v17, %v498_v51  ;;  %v525_v17 = vsub.f32 %v1394_v25, %v508_v56  ;;  %v316_v25 = vld [vmem:[%s1330_s9 + $0x18] sm:$0xff] }
 0x224   : > { %v530_v47 = vmul.f32 1.442695, %v521_v45  ;;  %v767_v5 = vsel %vm744_vm6, %v316_v25, 0.0  ;;  %637 = vmatpush.msra.mxu1 %v316_v25  ;;  %1105 = vmatpush.msra.mxu2 %v316_v25 }
 0x225   : > { %v528_v44 = vmul.f32 1.442695, %v520_v42  ;;  %v534_v53 = vmul.f32 1.442695, %v523_v14  ;;  %v538_v4 = vmul.f32 1.442695, %v525_v17  ;;  %1106 = vmatpush.msra.mxu3 %v316_v25 }
 0x226   : > { %638 = vmatpush.msra.mxu1 %v315_v61  ;;  %1107 = vmatpush.msra.mxu2 %v315_v61 }
 0x227   : > { %1181 = vpow2.f32 %v528_v44  ;;  %1108 = vmatpush.msra.mxu3 %v315_v61 }
 0x228   : > { %1183 = vpow2.f32 %v530_v47  ;;  %639 = vmatpush.msra.mxu1 %v314_v62  ;;  %1109 = vmatpush.msra.mxu2 %v314_v62 }
 0x229   : > { %1185 = vpow2.f32 %v532_v50  ;;  %v503_v15 = vpop.permute.xlu1 %502  ;;  %1110 = vmatpush.msra.mxu3 %v314_v62  ;;  %v692_v62 = vld [vmem:[#allocation2 + $0x10] sm:$0xff] }
 0x22a   : > { %1187 = vpow2.f32 %v534_v53  ;;  %v524_v16 = vsub.f32 %v1390_v18, %v503_v15  ;;  %v765_v18 = vsel %vm744_vm6, %v315_v61, 0.0  ;;  %v518_v23 = vpop.permute.xlu0 %517  ;;  %640 = vmatpush.msra.mxu1 %v313_v63  ;;  %1111 = vmatpush.msra.mxu2 %v313_v63 }
 0x22b   : > { %v766_v7 = vadd.f32 %v765_v18, %v764_v3  ;;  %1112 = vmatpush.msra.mxu3 %v313_v63  ;;  %v527_v27 = vsub.f32 %v1408_v41, %v518_v23 }
 0x22c   : > { %v536_v55 = vmul.f32 1.442695, %v524_v16 }
 0x22d   : > { %v1182_v48 = vpop.eup %1181  ;;  %v768_v10 = vadd.f32 %v767_v5, %v766_v7  ;;  %v542_v31 = vmul.f32 1.442695, %v527_v27 }
 0x22e   : > { %544 = vxpose.xlu2.b32.start [1/8] (short) %v1182_v48, 128  ;;  %v1184_v52 = vpop.eup %1183  ;;  %1189 = vpow2.f32 %v536_v55  ;;  %v690_v55 = vld [vmem:[#allocation2] sm:$0xff] }
 0x22f   : > { %v1186_v54 = vpop.eup %1185  ;;  %1191 = vpow2.f32 %v538_v4  ;;  %v770_v13 = vadd.f32 %v769_v9, %v768_v10  ;;  %v694_v4 = vld [vmem:[#allocation2 + $0x20] sm:$0xff] }
 0x230   : > { %v1188_v57 = vpop.eup %1187 }
 0x231   : > { %v513_v6 = vpop.permute.xlu1 %512  ;;  %v772_v20 = vadd.f32 %v771_v12, %v770_v13  ;;  %v696_v12 = vld [vmem:[#allocation2 + $0x30] sm:$0xff] }
 0x232   : > { %v526_v11 = vsub.f32 %v1399_v32, %v513_v6 }
 0x233   : > { %v774_v24 = vadd.f32 %v773_v19, %v772_v20 }
 0x234   : > { %v1190_v8 = vpop.eup %1189  ;;  %v540_v21 = vmul.f32 1.442695, %v526_v11 }
 0x235   : > { %v1192_v32 = vpop.eup %1191  ;;  %v776_v26 = vadd.f32 %v775_v22, %v774_v24 }
 0x236   : > { %545 = vxpose.xlu2.b32.cont [2/8] (short) %v1184_v52, 128  ;;  %1193 = vpow2.f32 %v540_v21  ;;  %v697_v21 = vld [vmem:[#allocation2 + $0x38] sm:$0xff] }
 0x237   : > { %v777_v29 = vrot.slane %v776_v26, 4  ;;  %1195 = vpow2.f32 %v542_v31 }
 0x239   : > { %v778_v30 = vadd.f32 %v777_v29, %v776_v26  ;;  %v1455_v16 = vpop.permute.xlu1 %709 }
 0x23a   : > { %v712_v56 = vmul.f32 %v1455_v16, %v690_v55  ;;  %v713_v17 = vmul.f32 %v1455_v16, %v691_v59  ;;  %v714_v63 = vmul.f32 %v1455_v16, %v692_v62  ;;  %v715_v2 = vmul.f32 %v1455_v16, %v693_v1 }
 0x23b   : > { %v779_v33 = vrot.slane %v778_v30, 2  ;;  %v716_v5 = vmul.f32 %v1455_v16, %v694_v4  ;;  %v718_v13 = vmul.f32 %v1455_v16, %v696_v12  ;;  %v719_v22 = vmul.f32 %v1455_v16, %v697_v21 }
 0x23c   : > { %v1194_v34 = vpop.eup %1193 }
 0x23d   : > { %v780_v35 = vadd.f32 %v779_v33, %v778_v30  ;;  %v1196_v40 = vpop.eup %1195  ;;  %v699_v30 = vld [vmem:[#allocation2 + $0x48] sm:$0xff] }
 0x23e   : > { %546 = vxpose.xlu2.b32.cont [3/8] (short) %v1186_v54, 128  ;;  %v721_v31 = vmul.f32 %v1455_v16, %v699_v30 }
 0x23f   : > { %v781_v36 = vrot.slane %v780_v35, 1 }
 0x241   : > { %v782_v38 = vadd.f32 %v781_v36, %v780_v35  ;;  %v700_v35 = vld [vmem:[#allocation2 + $0x50] sm:$0xff] }
 0x242   : > { %v722_v36 = vmul.f32 %v1455_v16, %v700_v35 }
 0x243   : > { %v783_v39 = vadd.f32 %v782_v38, %v761_v37 }
 0x245   : > { %785 = vst.msk [vmem:[#allocation4] sm:$0x1] %vm784_vm7, %v783_v39  ;;  %v701_v39 = vld [vmem:[#allocation2 + $0x58] sm:$0xff] }
 0x246   : > { %547 = vxpose.xlu2.b32.cont [4/8] (short) %v1188_v57, 128 }
 0x24e   : > { %548 = vxpose.xlu2.b32.cont [5/8] (short) %v1190_v8, 128  ;;  %v695_v8 = vld [vmem:[#allocation2 + $0x28] sm:$0xff] }
 0x24f   : > { %v717_v9 = vmul.f32 %v1455_v16, %v695_v8 }
 0x256   : > { %549 = vxpose.xlu2.b32.cont [6/8] (short) %v1192_v32, 128  ;;  %v698_v32 = vld [vmem:[#allocation2 + $0x40] sm:$0xff] }
 0x257   : > { %v720_v26 = vmul.f32 %v1455_v16, %v698_v32 }
 0x25e   : > { %550 = vxpose.xlu2.b32.cont [7/8] (short) %v1194_v34, 128 }
 0x266   : > { %551 = vxpose.xlu2.b32.end [8/8] (short) %v1196_v40, 128  ;;  %v723_v40 = vmul.f32 %v1455_v16, %v701_v39 }
 0x2c7   : > { %v560_v42 = vpop.trf.xlu2 }
 0x2c8   : > { %1078 = vmatmul.msk.f32.vlgmr.msra.gmra.mxu1 %vm576_vm8, %v560_v42 }
 0x2cf   : > { %v561_v41 = vpop.trf.xlu2 }
 0x2d0   : > { %1079 = vmatmul.msk.f32.gmra.mxu1 %vm576_vm8, %v561_v41 }
 0x2d7   : > { %v562_v43 = vpop.trf.xlu2 }
 0x2d8   : > { %1080 = vmatmul.msk.f32.gmra.mxu1 %vm576_vm8, %v562_v43  ;;  %v702_v43 = vld [vmem:[#allocation2 + $0x60] sm:$0xff] }
 0x2df   : > { %v563_v44 = vpop.trf.xlu2 }
 0x2e0   : > { %1081 = vmatmul.msk.f32.gmra.mxu1 %vm576_vm8, %v563_v44  ;;  %v724_v44 = vmul.f32 %v1455_v16, %v702_v43 }
 0x2e7   : > { %v564_v45 = vpop.trf.xlu2 }
 0x2e8   : > { %1082 = vmatmul.msk.f32.gmra.mxu1 %vm576_vm8, %v564_v45 }
 0x2ef   : > { %v565_v46 = vpop.trf.xlu2 }
 0x2f0   : > { %1083 = vmatmul.msk.f32.gmra.mxu1 %vm576_vm8, %v565_v46 }
 0x2f7   : > { %v566_v47 = vpop.trf.xlu2 }
 0x2f8   : > { %1084 = vmatmul.msk.f32.vlgmr.msra.gmra.mxu2 %vm576_vm8, %v566_v47  ;;  %v703_v47 = vld [vmem:[#allocation2 + $0x68] sm:$0xff] }
 0x2ff   : > { %v567_v48 = vpop.trf.xlu2 }
 0x300   : > { %1085 = vmatmul.msk.f32.gmra.mxu2 %vm576_vm8, %v567_v48  ;;  %v725_v48 = vmul.f32 %v1455_v16, %v703_v47 }
 0x307   : > { %v568_v49 = vpop.trf.xlu2 }
 0x308   : > { %1086 = vmatmul.msk.f32.gmra.mxu2 %vm576_vm8, %v568_v49 }
 0x30f   : > { %v569_v50 = vpop.trf.xlu2 }
 0x310   : > { %1087 = vmatmul.msk.f32.gmra.mxu2 %vm576_vm8, %v569_v50 }
 0x317   : > { %v570_v51 = vpop.trf.xlu2 }
 0x318   : > { %1088 = vmatmul.msk.f32.gmra.mxu2 %vm576_vm8, %v570_v51  ;;  %v704_v51 = vld [vmem:[#allocation2 + $0x70] sm:$0xff] }
 0x31f   : > { %v571_v52 = vpop.trf.xlu2 }
 0x320   : > { %1089 = vmatmul.msk.f32.gmra.mxu2 %vm576_vm8, %v571_v52  ;;  %v726_v52 = vmul.f32 %v1455_v16, %v704_v51 }
 0x327   : > { %v572_v14 = vpop.trf.xlu2 }
 0x328   : > { %1090 = vmatmul.msk.f32.vlgmr.msra.gmra.mxu3 %vm576_vm8, %v572_v14 }
 0x32f   : > { %v573_v53 = vpop.trf.xlu2 }
 0x330   : > { %1091 = vmatmul.msk.f32.gmra.mxu3 %vm576_vm8, %v573_v53 }
 0x337   : > { %v574_v15 = vpop.trf.xlu2 }
 0x338   : > { %1092 = vmatmul.msk.f32.gmra.mxu3 %vm576_vm8, %v574_v15  ;;  %v705_v15 = vld [vmem:[#allocation2 + $0x78] sm:$0xff] }
 0x33f   : > { %v575_v54 = vpop.trf.xlu2 }
 0x340   : > { %1093 = vmatmul.msk.f32.gmra.mxu3 %vm576_vm8, %v575_v54  ;;  %v727_v54 = vmul.f32 %v1455_v16, %v705_v15 }
 0x345   : > { %v642_v57 = vpop.f32.mrf.mxu1 }
 0x346   : > { %v728_v58 = vadd.f32 %v712_v56, %v642_v57 }
 0x348   : > { %745 = vst.msk [vmem:[#allocation2] sm:$0xff] %vm744_vm6, %v728_v58 }
 0x34d   : > { %v645_v60 = vpop.f32.mrf.mxu1 }
 0x34e   : > { %v729_v61 = vadd.f32 %v713_v17, %v645_v60 }
 0x350   : > { %746 = vst.msk [vmem:[#allocation2 + $0x8] sm:$0xff] %vm744_vm6, %v729_v61 }
 0x355   : > { %v648_v18 = vpop.f32.mrf.mxu1 }
 0x356   : > { %v730_v0 = vadd.f32 %v714_v63, %v648_v18 }
 0x358   : > { %747 = vst.msk [vmem:[#allocation2 + $0x10] sm:$0xff] %vm744_vm6, %v730_v0 }
 0x35d   : > { %v651_v25 = vpop.f32.mrf.mxu1 }
 0x35e   : > { %v731_v3 = vadd.f32 %v715_v2, %v651_v25 }
 0x360   : > { %748 = vst.msk [vmem:[#allocation2 + $0x18] sm:$0xff] %vm744_vm6, %v731_v3 }
 0x365   : > { %v654_v6 = vpop.f32.mrf.mxu1 }
 0x366   : > { %v732_v7 = vadd.f32 %v716_v5, %v654_v6 }
 0x368   : > { %749 = vst.msk [vmem:[#allocation2 + $0x20] sm:$0xff] %vm744_vm6, %v732_v7 }
 0x36d   : > { %v657_v10 = vpop.f32.mrf.mxu1 }
 0x36e   : > { %v733_v11 = vadd.f32 %v717_v9, %v657_v10 }
 0x370   : > { %750 = vst.msk [vmem:[#allocation2 + $0x28] sm:$0xff] %vm744_vm6, %v733_v11 }
 0x37b   : > { %v660_v19 = vpop.f32.mrf.mxu2 }
 0x37c   : > { %v734_v20 = vadd.f32 %v718_v13, %v660_v19 }
 0x37e   : > { %751 = vst.msk [vmem:[#allocation2 + $0x30] sm:$0xff] %vm744_vm6, %v734_v20 }
 0x383   : > { %v663_v23 = vpop.f32.mrf.mxu2 }
 0x384   : > { %v735_v24 = vadd.f32 %v719_v22, %v663_v23 }
 0x386   : > { %752 = vst.msk [vmem:[#allocation2 + $0x38] sm:$0xff] %vm744_vm6, %v735_v24 }
 0x38b   : > { %v666_v27 = vpop.f32.mrf.mxu2 }
 0x38c   : > { %v736_v29 = vadd.f32 %v720_v26, %v666_v27 }
 0x38e   : > { %753 = vst.msk [vmem:[#allocation2 + $0x40] sm:$0xff] %vm744_vm6, %v736_v29 }
 0x393   : > { %v669_v33 = vpop.f32.mrf.mxu2 }
 0x394   : > { %v737_v34 = vadd.f32 %v721_v31, %v669_v33 }
 0x396   : > { %754 = vst.msk [vmem:[#allocation2 + $0x48] sm:$0xff] %vm744_vm6, %v737_v34 }
 0x39b   : > { %v672_v37 = vpop.f32.mrf.mxu2 }
 0x39c   : > { %v738_v38 = vadd.f32 %v722_v36, %v672_v37 }
 0x39e   : > { %755 = vst.msk [vmem:[#allocation2 + $0x50] sm:$0xff] %vm744_vm6, %v738_v38 }
 0x3a3   : > { %v675_v42 = vpop.f32.mrf.mxu2 }
 0x3a4   : > { %v739_v41 = vadd.f32 %v723_v40, %v675_v42 }
 0x3a6   : > { %756 = vst.msk [vmem:[#allocation2 + $0x58] sm:$0xff] %vm744_vm6, %v739_v41 }
 0x3ab   : > { %v678_v45 = vpop.f32.mrf.mxu3 }
 0x3ac   : > { %v740_v46 = vadd.f32 %v724_v44, %v678_v45 }
 0x3ae   : > { %757 = vst.msk [vmem:[#allocation2 + $0x60] sm:$0xff] %vm744_vm6, %v740_v46 }
 0x3b3   : > { %v681_v49 = vpop.f32.mrf.mxu3 }
 0x3b4   : > { %v741_v50 = vadd.f32 %v725_v48, %v681_v49 }
 0x3b6   : > { %758 = vst.msk [vmem:[#allocation2 + $0x68] sm:$0xff] %vm744_vm6, %v741_v50 }
 0x3bb   : > { %v684_v14 = vpop.f32.mrf.mxu3 }
 0x3bc   : > { %v742_v53 = vadd.f32 %v726_v52, %v684_v14 }
 0x3be   : > { %759 = vst.msk [vmem:[#allocation2 + $0x70] sm:$0xff] %vm744_vm6, %v742_v53 }
 0x3c2   : > { %789 = sbr.rel (%p1094_p10) target bundleno = 988 (0x3dc), region = 40 }
 0x3c3   : > { %v687_v55 = vpop.f32.mrf.mxu3 }
 0x3c4   : > { %v743_v56 = vadd.f32 %v727_v54, %v687_v55 }
 0x3c6   : > { %760 = vst.msk [vmem:[#allocation2 + $0x78] sm:$0xff] %vm744_vm6, %v743_v56 }
 0x3c7   : > { %v806_v57 = vld [vmem:[#allocation4] sm:$0x1]  ;;  %v1256_v59 = vmov 0.0   ;;  %v791_v60 = vld [vmem:[#allocation2 + $0x8] sm:$0xff]  ;;  %v792_v61 = vld [vmem:[#allocation2 + $0x10] sm:$0xff]  ;;  %v828_v4 = vshrl.u32 %v391_v28, 7 }
 0x3c8   : > { %v807_v58 = vmul.f32 9.534626e-06, %v806_v57  ;;  %922 = vst.msk [vmem:[%s1335_s22 + $0x70] sm:$0xff] %vm744_vm6, %v1256_v59  ;;  %v790_v17 = vld [vmem:[#allocation2] sm:$0xff]  ;;  %v793_v62 = vld [vmem:[#allocation2 + $0x18] sm:$0xff]  ;;  %v795_v2 = vld [vmem:[#allocation2 + $0x28] sm:$0xff] }
 0x3c9   : > { %923 = vst.msk [vmem:[%s1335_s22 + $0x78] sm:$0xff] %vm744_vm6, %v1256_v59  ;;  %v794_v63 = vld [vmem:[#allocation2 + $0x20] sm:$0xff]  ;;  %v796_v3 = vld [vmem:[#allocation2 + $0x30] sm:$0xff]  ;;  %v797_v6 = vld [vmem:[#allocation2 + $0x38] sm:$0xff]  ;;  %v841_v13 = vadd.s32 104, %v828_v4 }
 0x3ca   : > { %v809_v16 = vperm.slane %v807_v58, 0  ;;  %v798_v8 = vld [vmem:[#allocation2 + $0x40] sm:$0xff]  ;;  %v799_v10 = vld [vmem:[#allocation2 + $0x48] sm:$0xff]  ;;  %v800_v28 = vld [vmem:[#allocation2 + $0x50] sm:$0xff] }
 0x3cb   : > { %v803_v12 = vld [vmem:[#allocation2 + $0x68] sm:$0xff]  ;;  %v801_v20 = vld [vmem:[#allocation2 + $0x58] sm:$0xff]  ;;  %v802_v22 = vld [vmem:[#allocation2 + $0x60] sm:$0xff]  ;;  %vm857_vm9 = vcmp.lt.s32.totalorder %v841_v13, 110 }
 0x3cc   : > { %v811_v18 = vadd.f32 %v809_v16, %v790_v17  ;;  %v812_v0 = vadd.f32 %v809_v16, %v791_v60  ;;  %v813_v1 = vadd.f32 %v809_v16, %v792_v61  ;;  %v814_v25 = vadd.f32 %v809_v16, %v793_v62 }
 0x3cd   : > { %v815_v5 = vadd.f32 %v809_v16, %v794_v63  ;;  %v816_v7 = vadd.f32 %v809_v16, %v795_v2  ;;  %v817_v9 = vadd.f32 %v809_v16, %v796_v3  ;;  %v818_v11 = vadd.f32 %v809_v16, %v797_v6 }
 0x3ce   : > { %908 = vst.msk [vmem:[%s1335_s22] sm:$0xff] %vm744_vm6, %v811_v18  ;;  %v819_v19 = vadd.f32 %v809_v16, %v798_v8  ;;  %v820_v21 = vadd.f32 %v809_v16, %v799_v10  ;;  %v821_v23 = vadd.f32 %v809_v16, %v800_v28  ;;  %v824_v24 = vadd.f32 %v809_v16, %v803_v12 }
 0x3cf   : > { %909 = vst.msk [vmem:[%s1335_s22 + $0x8] sm:$0xff] %vm744_vm6, %v812_v0  ;;  %v822_v32 = vadd.f32 %v809_v16, %v801_v20  ;;  %v823_v26 = vadd.f32 %v809_v16, %v802_v22 }
 0x3d0   : > { %910 = vst.msk [vmem:[%s1335_s22 + $0x10] sm:$0xff] %vm744_vm6, %v813_v1  ;;  %v905_v27 = vsel %vm857_vm9, %v824_v24, 0.0 }
 0x3d1   : > { %911 = vst.msk [vmem:[%s1335_s22 + $0x18] sm:$0xff] %vm744_vm6, %v814_v25 }
 0x3d2   : > { %912 = vst.msk [vmem:[%s1335_s22 + $0x20] sm:$0xff] %vm744_vm6, %v815_v5 }
 0x3d3   : > { %913 = vst.msk [vmem:[%s1335_s22 + $0x28] sm:$0xff] %vm744_vm6, %v816_v7 }
 0x3d4   : > { %914 = vst.msk [vmem:[%s1335_s22 + $0x30] sm:$0xff] %vm744_vm6, %v817_v9 }
 0x3d5   : > { %915 = vst.msk [vmem:[%s1335_s22 + $0x38] sm:$0xff] %vm744_vm6, %v818_v11 }
 0x3d6   : > { %916 = vst.msk [vmem:[%s1335_s22 + $0x40] sm:$0xff] %vm744_vm6, %v819_v19 }
 0x3d7   : > { %917 = vst.msk [vmem:[%s1335_s22 + $0x48] sm:$0xff] %vm744_vm6, %v820_v21 }
 0x3d8   : > { %918 = vst.msk [vmem:[%s1335_s22 + $0x50] sm:$0xff] %vm744_vm6, %v821_v23 }
 0x3d9   : > { %919 = vst.msk [vmem:[%s1335_s22 + $0x58] sm:$0xff] %vm744_vm6, %v822_v32 }
 0x3da   : > { %920 = vst.msk [vmem:[%s1335_s22 + $0x60] sm:$0xff] %vm744_vm6, %v823_v26 }
 0x3db   : > { %921 = vst.msk [vmem:[%s1335_s22 + $0x68] sm:$0xff] %vm744_vm6, %v905_v27 }
 0x3dc PF: > { %s13_s18 = sadd.s32 1, %s1251_s18   ;;  %s1549_s29 = sld [smem:[#allocation5_spill]] }
 0x3dd   : > { %p10_p11 = scmp.ge.s32.totalorder %s13_s18, 18   ;;  %s1550_s12 = smov %s1239_s15 }
 0x3de   : > { %s1551_s13 = smov %s1243_s16  ;;  %s1552_s14 = smov %s1247_s17 }
 0x3df   : > { %s1553_s15 = smov %s1557_s19  ;;  %s1554_s16 = smov %s1561_s20 }
 0x3e0   :  { %12 = sbr.rel (!%p10_p11) target bundleno = 4 (0x4), region = 73 }
 0x3e2   : > { %s1555_s17 = smov %s1549_s29 }

</bundles_post_ra>
